<compile_context>
chip_gen: v7x
topology: tpu7x:2x2x1
jax: 0.10.0
libtpu: 0.0.40
codegen_flags: <defaults>
</compile_context>

<pallas_src>
import functools

import jax
import jax.numpy as jnp
from jax.experimental import pallas as pl
from jax.experimental.pallas import tpu as pltpu


# ----------------------------- Pallas kernel ------------------------------- #

def _conv_bn_relu_gap_kernel(x_ref, w_ref, shift_ref, o_ref, *,
                             WP, WO, HO, KH, M, L, BS):
    """Width-im2col valid conv (stride 1) + BN shift + ReLU + MXU global avg pool.

    x_ref:     (1, BS*L, KP)   bf16  lane-dense width-im2col activation slab
    w_ref:     (KH, KP, Cout)  bf16  BN scale folded in, K padded to KP (mult of 128)
    shift_ref: (1, Cout)       f32   folded BN shift
    o_ref:     (1, BS, Cout)   f32   pooled features for the BS images of this step
    """
    cout = o_ref.shape[-1]
    m_big = (BS - 1) * L + M            # conv rows for all BS images incl. masked rows

    x = x_ref[0]                        # (BS*L, KP) bf16, single aligned full-tile load

    # Implicit GEMM over the KH row taps; each dot has K = KP (>=128, lane-dense).
    # Static offsets di*WP are multiples of 16 -> packed-bf16 sublane aligned slices.
    # Clean "dot -> add into acc" chain (no interleaved casts) -> MRB accumulation on v7x.
    acc = jnp.dot(x[0:m_big, :], w_ref[0], preferred_element_type=jnp.float32)
    for di in range(1, KH):
        off = di * WP
        acc = acc + jnp.dot(x[off:off + m_big, :], w_ref[di],
                            preferred_element_type=jnp.float32)

    y = jnp.maximum(acc + shift_ref[...], 0.0).astype(jnp.bfloat16)  # BN shift + ReLU

    # In-kernel pooling mask (no HBM tensor): acc row q is a valid output row of image b
    # iff 0 <= q - b*L < M and (q - b*L) % WP < WO.  The pool reduction rides the MXU
    # as a (BS, m_big) x (m_big, Cout) matmul; the 1/(HO*WO) scale is applied in f32.
    q = jax.lax.broadcasted_iota(jnp.int32, (BS, m_big), 1)
    b = jax.lax.broadcasted_iota(jnp.int32, (BS, m_big), 0)
    rr = q - b * L
    mask = ((rr >= 0) & (rr < M) & ((rr % WP) < WO)).astype(jnp.bfloat16)
    pooled = jnp.dot(mask, y, preferred_element_type=jnp.float32)    # (BS, Cout)
    o_ref[...] = (pooled * (1.0 / (HO * WO)))[None]                  # lane-dense store


# ------------------------------ wrappers ----------------------------------- #

def _pick_images_per_step(n, cap=8):
    """Images packed per grid step: amortize the ~0.35us/step fixed cost while keeping
    at least 2 grid steps so both v7x TensorCores get work."""
    best = 1
    for bs in range(1, min(cap, n) + 1):
        if n % bs == 0 and n // bs >= 2:
            best = bs
    return best


def conv_bn_relu_gap(x_nhwc, w_hwio, gamma, beta, mean, var, *, eps=1e-3):
    """Fused stride-1 valid conv + eval-BN + ReLU + global average pool (Pallas)."""
    n, h, w, cin = x_nhwc.shape
    kh, kw, _, cout = w_hwio.shape
    ho, wo = h - kh + 1, w - kw + 1

    wp = ((w + 7) // 8) * 8                    # padded row stride -> even di*wp offsets
    l = h * wp                                 # rows per image in the activation slab
    m = ho * wp                                # conv rows per image incl. masked pad cols
    kpad = ((kw * cin + 127) // 128) * 128     # contraction padded to a multiple of 128
    bs = _pick_images_per_step(n)
    steps = n // bs

    # Fold eval-BN into the weights (scale) and a per-channel shift.
    inv_std = jax.lax.rsqrt(var + eps)
    scale = (gamma * inv_std).astype(jnp.float32)
    shift = (beta - mean * scale).reshape(1, cout).astype(jnp.float32)
    wf = w_hwio.astype(jnp.float32) * scale[None, None, None, :]     # (kh,kw,cin,cout)
    wf = wf.reshape(kh, kw * cin, cout)
    wf = jnp.pad(wf, ((0, 0), (0, kpad - kw * cin), (0, 0))).astype(jnp.bfloat16)

    # Width (dj) im2col in the wrapper: lane-dense activation slab (last dim kpad),
    # built from per-image zero-padded row shifts (no cross-image data in the slab).
    xp = jnp.pad(x_nhwc, ((0, 0), (0, 0), (0, wp - w), (0, 0))).reshape(n, l, cin)
    xp = jnp.pad(xp, ((0, 0), (0, kw - 1), (0, 0)))
    x_wide = jnp.concatenate([xp[:, dj:dj + l, :] for dj in range(kw)], axis=-1)
    x_wide = jnp.pad(x_wide, ((0, 0), (0, 0), (0, kpad - kw * cin)))
    x_wide = x_wide.astype(jnp.bfloat16).reshape(steps, bs * l, kpad)

    kernel = functools.partial(_conv_bn_relu_gap_kernel,
                               WP=wp, WO=wo, HO=ho, KH=kh, M=m, L=l, BS=bs)
    m_big = (bs - 1) * l + m
    # Honest cost: the kernel computes m_big rows (incl. masked pad columns), KH dots of
    # depth kpad each, plus the MXU pool matmul; no mask tensor is read from HBM.
    flops = steps * (2 * kh * m_big * kpad * cout + 2 * bs * m_big * cout)
    bytes_accessed = (x_wide.size * 2 + wf.size * 2 + shift.size * 4 + n * cout * 4)

    out = pl.pallas_call(
        kernel,
        out_shape=jax.ShapeDtypeStruct((steps, bs, cout), jnp.float32),
        grid_spec=pltpu.PrefetchScalarGridSpec(
            num_scalar_prefetch=0,
            grid=(steps,),
            in_specs=[
                pl.BlockSpec((1, bs * l, kpad), lambda g: (g, 0, 0)),
                pl.BlockSpec((kh, kpad, cout), lambda g: (0, 0, 0)),
                pl.BlockSpec((1, cout), lambda g: (0, 0)),
            ],
            out_specs=pl.BlockSpec((1, bs, cout), lambda g: (g, 0, 0)),
        ),
        compiler_params=pltpu.CompilerParams(dimension_semantics=("parallel",)),
        cost_estimate=pl.CostEstimate(flops=flops, transcendentals=0,
                                      bytes_accessed=bytes_accessed),
    )(x_wide, wf, shift)
    return out.reshape(n, cout)


def _conv_bn_relu_xla(x, w, g, b, m, v, *, stride, eps=1e-3):
    """conv1 (BasicConv2d, 3->32): left to XLA per perf review (K=27, Cout=32 is
    MXU-starved and lane-sparse in Pallas)."""
    y = jax.lax.conv_general_dilated(
        x, w, window_strides=(stride, stride), padding="VALID",
        dimension_numbers=("NHWC", "HWIO", "NHWC"))
    inv = jax.lax.rsqrt(v + eps)
    return jnp.maximum(y * (g * inv) + (b - m * g * inv), 0.0)


# --------------------------- module-level wrapper --------------------------- #

def init_params(key, cin=3, c1=32, c2=128):
    """Deterministic synthetic weights for the stem (inception-style BasicConv2d)."""
    ks = jax.random.split(key, 10)
    return {
        "w1": 0.1 * jax.random.normal(ks[0], (3, 3, cin, c1), jnp.float32),
        "g1": 1.0 + 0.1 * jax.random.normal(ks[1], (c1,), jnp.float32),
        "b1": 0.1 * jax.random.normal(ks[2], (c1,), jnp.float32),
        "m1": 0.05 * jax.random.normal(ks[3], (c1,), jnp.float32),
        "v1": 0.5 + jax.random.uniform(ks[4], (c1,), jnp.float32),
        "w2": 0.05 * jax.random.normal(ks[5], (3, 3, c1, c2), jnp.float32),
        "g2": 1.0 + 0.1 * jax.random.normal(ks[6], (c2,), jnp.float32),
        "b2": 0.1 * jax.random.normal(ks[7], (c2,), jnp.float32),
        "m2": 0.05 * jax.random.normal(ks[8], (c2,), jnp.float32),
        "v2": 0.5 + jax.random.uniform(ks[9], (c2,), jnp.float32),
    }


@jax.jit
def feature_extractor_forward(x_nchw, p):
    """Eval-mode forward: feature = model(x); fc = Identity -> pooled features."""
    x = jnp.transpose(x_nchw, (0, 2, 3, 1)).astype(jnp.float32)   # NCHW -> NHWC
    x = _conv_bn_relu_xla(x, p["w1"], p["g1"], p["b1"], p["m1"], p["v1"], stride=2)
    # Fused Pallas kernel: conv2 + BN + ReLU + global average pool; fc = Identity.
    return conv_bn_relu_gap(x, p["w2"], p["g2"], p["b2"], p["m2"], p["v2"])


# ----------------------------- pure-JAX reference --------------------------- #

def _reference(x_nchw, p, eps=1e-3):
    x = jnp.transpose(x_nchw, (0, 2, 3, 1)).astype(jnp.float32)

    def block(x, w, g, b, m, v, stride):
        y = jax.lax.conv_general_dilated(
            x, w, window_strides=(stride, stride), padding="VALID",
            dimension_numbers=("NHWC", "HWIO", "NHWC"))
        inv = jax.lax.rsqrt(v + eps)
        return jnp.maximum(y * (g * inv) + (b - m * g * inv), 0.0)

    x = block(x, p["w1"], p["g1"], p["b1"], p["m1"], p["v1"], 2)
    x = block(x, p["w2"], p["g2"], p["b2"], p["m2"], p["v2"], 1)
    return jnp.mean(x, axis=(1, 2))


if __name__ == "__main__":
    key = jax.random.PRNGKey(0)
    k_x, k_p = jax.random.split(key)
    x = jax.random.normal(k_x, (2, 3, 32, 32), jnp.float32)   # NCHW, like PyTorch input
    params = init_params(k_p)

    feat = jax.block_until_ready(feature_extractor_forward(x, params))
    assert feat.shape == (2, 128), feat.shape

    ref = jax.block_until_ready(_reference(x, params))
    assert jnp.allclose(feat, ref, atol=2e-2, rtol=2e-2), \
        float(jnp.max(jnp.abs(feat - ref)))

    print("KERNEL_OK")
</pallas_src>

<mosaic_0001>
module attributes {stable_mosaic.version = 11 : i64} {
  func.func @_conv_bn_relu_gap_kernel(%arg0: i32, %arg1: memref<1x240x128xbf16, #tpu.memory_space<vmem>>, %arg2: memref<3x128x128xbf16, #tpu.memory_space<vmem>>, %arg3: memref<1x128xf32, #tpu.memory_space<vmem>>, %arg4: memref<1x1x128xf32, #tpu.memory_space<vmem>>) attributes {dimension_semantics = [#tpu.dimension_semantics<parallel>], iteration_bounds = array<i64: 2>, scalar_prefetch = 0 : i64, scratch_operands = 0 : i64, tpu.core_type = #tpu.core_type<tc>, window_params = [{transform_indices = @transform_0, window_bounds = array<i64: 1, 240, 128>}, {pipeline_mode = #tpu.pipeline_mode<synchronous>, transform_indices = @transform_1, window_bounds = array<i64: 3, 128, 128>}, {pipeline_mode = #tpu.pipeline_mode<synchronous>, transform_indices = @transform_2, window_bounds = array<i64: 1, 128>}, {transform_indices = @transform_3, window_bounds = array<i64: 1, 1, 128>}]} {
    %c0 = arith.constant 0 : index
    %c0_0 = arith.constant 0 : index
    %c0_1 = arith.constant 0 : index
    %0 = vector.load %arg1[%c0, %c0_0, %c0_1] : memref<1x240x128xbf16, #tpu.memory_space<vmem>>, vector<1x240x128xbf16>
    %1 = vector.shape_cast %0 : vector<1x240x128xbf16> to vector<240x128xbf16>
    %2 = vector.extract_strided_slice %1 {offsets = [0, 0], sizes = [208, 128], strides = [1, 1]} : vector<240x128xbf16> to vector<208x128xbf16>
    %c0_2 = arith.constant 0 : index
    %c0_3 = arith.constant 0 : index
    %c0_4 = arith.constant 0 : index
    %3 = vector.load %arg2[%c0_2, %c0_3, %c0_4] : memref<3x128x128xbf16, #tpu.memory_space<vmem>>, vector<1x128x128xbf16>
    %4 = vector.shape_cast %3 : vector<1x128x128xbf16> to vector<128x128xbf16>
    %cst = arith.constant dense<0.000000e+00> : vector<208x128xf32>
    %5 = tpu.matmul %2, %4, %cst {dimension_numbers = #tpu.dot_dimension_numbers<[1], [0], [0], [1], [0, 0, 1, 1], [], []>} : vector<208x128xbf16>, vector<128x128xbf16>, vector<208x128xf32> -> vector<208x128xf32>
    %6 = vector.extract_strided_slice %1 {offsets = [16, 0], sizes = [208, 128], strides = [1, 1]} : vector<240x128xbf16> to vector<208x128xbf16>
    %c1 = arith.constant 1 : index
    %c0_5 = arith.constant 0 : index
    %c0_6 = arith.constant 0 : index
    %7 = vector.load %arg2[%c1, %c0_5, %c0_6] : memref<3x128x128xbf16, #tpu.memory_space<vmem>>, vector<1x128x128xbf16>
    %8 = vector.shape_cast %7 : vector<1x128x128xbf16> to vector<128x128xbf16>
    %cst_7 = arith.constant dense<0.000000e+00> : vector<208x128xf32>
    %9 = tpu.matmul %6, %8, %cst_7 {dimension_numbers = #tpu.dot_dimension_numbers<[1], [0], [0], [1], [0, 0, 1, 1], [], []>} : vector<208x128xbf16>, vector<128x128xbf16>, vector<208x128xf32> -> vector<208x128xf32>
    %10 = arith.addf %5, %9 : vector<208x128xf32>
    %11 = vector.extract_strided_slice %1 {offsets = [32, 0], sizes = [208, 128], strides = [1, 1]} : vector<240x128xbf16> to vector<208x128xbf16>
    %c2 = arith.constant 2 : index
    %c0_8 = arith.constant 0 : index
    %c0_9 = arith.constant 0 : index
    %12 = vector.load %arg2[%c2, %c0_8, %c0_9] : memref<3x128x128xbf16, #tpu.memory_space<vmem>>, vector<1x128x128xbf16>
    %13 = vector.shape_cast %12 : vector<1x128x128xbf16> to vector<128x128xbf16>
    %cst_10 = arith.constant dense<0.000000e+00> : vector<208x128xf32>
    %14 = tpu.matmul %11, %13, %cst_10 {dimension_numbers = #tpu.dot_dimension_numbers<[1], [0], [0], [1], [0, 0, 1, 1], [], []>} : vector<208x128xbf16>, vector<128x128xbf16>, vector<208x128xf32> -> vector<208x128xf32>
    %15 = arith.addf %10, %14 : vector<208x128xf32>
    %c0_11 = arith.constant 0 : index
    %c0_12 = arith.constant 0 : index
    %16 = vector.load %arg3[%c0_11, %c0_12] : memref<1x128xf32, #tpu.memory_space<vmem>>, vector<1x128xf32>
    %17 = vector.broadcast %16 : vector<1x128xf32> to vector<208x128xf32>
    %18 = arith.addf %15, %17 : vector<208x128xf32>
    %cst_13 = arith.constant 0.000000e+00 : f32
    %19 = vector.broadcast %cst_13 : f32 to vector<208x128xf32>
    %20 = arith.maximumf %18, %19 : vector<208x128xf32>
    %21 = arith.truncf %20 : vector<208x128xf32> to vector<208x128xbf16>
    %22 = tpu.iota {dimensions = array<i32: 1>} : vector<1x208xi32>
    %23 = tpu.iota {dimensions = array<i32: 0>} : vector<1x208xi32>
    %c240_i32 = arith.constant 240 : i32
    %24 = vector.broadcast %c240_i32 : i32 to vector<1x208xi32>
    %25 = arith.muli %23, %24 : vector<1x208xi32>
    %26 = arith.subi %22, %25 : vector<1x208xi32>
    %c0_i32 = arith.constant 0 : i32
    %27 = vector.broadcast %c0_i32 : i32 to vector<1x208xi32>
    %28 = arith.cmpi sge, %26, %27 : vector<1x208xi32>
    %c208_i32 = arith.constant 208 : i32
    %29 = vector.broadcast %c208_i32 : i32 to vector<1x208xi32>
    %30 = arith.cmpi slt, %26, %29 : vector<1x208xi32>
    %31 = arith.andi %28, %30 : vector<1x208xi1>
    %c16_i32 = arith.constant 16 : i32
    %c0_i32_14 = arith.constant 0 : i32
    %32 = arith.cmpi eq, %c16_i32, %c0_i32_14 : i32
    %c1_i32 = arith.constant 1 : i32
    %33 = arith.select %32, %c1_i32, %c16_i32 : i32
    %34 = vector.broadcast %33 : i32 to vector<1x208xi32>
    %35 = arith.remsi %26, %34 : vector<1x208xi32>
    %c0_i32_15 = arith.constant 0 : i32
    %36 = vector.broadcast %c0_i32_15 : i32 to vector<1x208xi32>
    %37 = arith.cmpi ne, %35, %36 : vector<1x208xi32>
    %c0_i32_16 = arith.constant 0 : i32
    %38 = vector.broadcast %c0_i32_16 : i32 to vector<1x208xi32>
    %39 = arith.cmpi slt, %35, %38 : vector<1x208xi32>
    %c0_i32_17 = arith.constant 0 : i32
    %40 = arith.cmpi slt, %33, %c0_i32_17 : i32
    %41 = vector.broadcast %40 : i1 to vector<1x208xi1>
    %42 = vector.broadcast %41 : vector<1x208xi1> to vector<1x208xi1>
    %43 = arith.xori %39, %42 : vector<1x208xi1>
    %44 = arith.andi %43, %37 : vector<1x208xi1>
    %45 = vector.broadcast %33 : i32 to vector<1x208xi32>
    %46 = arith.addi %35, %45 : vector<1x208xi32>
    %47 = arith.select %44, %46, %35 : vector<1x208xi1>, vector<1x208xi32>
    %c13_i32 = arith.constant 13 : i32
    %48 = vector.broadcast %c13_i32 : i32 to vector<1x208xi32>
    %49 = arith.cmpi slt, %47, %48 : vector<1x208xi32>
    %50 = arith.andi %31, %49 : vector<1x208xi1>
    %51 = arith.extui %50 : vector<1x208xi1> to vector<1x208xi32>
    %52 = arith.sitofp %51 : vector<1x208xi32> to vector<1x208xf32>
    %53 = arith.truncf %52 : vector<1x208xf32> to vector<1x208xbf16>
    %cst_18 = arith.constant dense<0.000000e+00> : vector<1x128xf32>
    %54 = tpu.matmul %53, %21, %cst_18 {dimension_numbers = #tpu.dot_dimension_numbers<[1], [0], [0], [1], [0, 0, 1, 1], [], []>} : vector<1x208xbf16>, vector<208x128xbf16>, vector<1x128xf32> -> vector<1x128xf32>
    %cst_19 = arith.constant 5.917160e-03 : f32
    %55 = vector.broadcast %cst_19 : f32 to vector<1x128xf32>
    %56 = arith.mulf %54, %55 : vector<1x128xf32>
    %57 = vector.shape_cast %56 : vector<1x128xf32> to vector<1x1x128xf32>
    %c0_20 = arith.constant 0 : index
    %c0_21 = arith.constant 0 : index
    %c0_22 = arith.constant 0 : index
    %58 = vector.load %arg4[%c0_20, %c0_21, %c0_22] : memref<1x1x128xf32, #tpu.memory_space<vmem>>, vector<1x1x128xf32>
    tpu.vector_store %arg4[%c0_20, %c0_21, %c0_22], %57 {strides = array<i32>} : memref<1x1x128xf32, #tpu.memory_space<vmem>>, vector<1x1x128xf32>,
    return
  }
  func.func @transform_0(%arg0: i32) -> (i32, i32, i32) {
    %c0_i32 = arith.constant 0 : i32
    %c0_i32_0 = arith.constant 0 : i32
    %c0_i32_1 = arith.constant 0 : i32
    return %arg0, %c0_i32, %c0_i32_0 : i32, i32, i32
  }
  func.func @transform_1(%arg0: i32) -> (i32, i32, i32) {
    %c0_i32 = arith.constant 0 : i32
    %c0_i32_0 = arith.constant 0 : i32
    %c0_i32_1 = arith.constant 0 : i32
    %c0_i32_2 = arith.constant 0 : i32
    return %c0_i32, %c0_i32_0, %c0_i32_1 : i32, i32, i32
  }
  func.func @transform_2(%arg0: i32) -> (i32, i32) {
    %c0_i32 = arith.constant 0 : i32
    %c0_i32_0 = arith.constant 0 : i32
    %c0_i32_1 = arith.constant 0 : i32
    return %c0_i32, %c0_i32_0 : i32, i32
  }
  func.func @transform_3(%arg0: i32) -> (i32, i32, i32) {
    %c0_i32 = arith.constant 0 : i32
    %c0_i32_0 = arith.constant 0 : i32
    %c0_i32_1 = arith.constant 0 : i32
    return %arg0, %c0_i32, %c0_i32_0 : i32, i32, i32
  }
}

</mosaic_0001>

<bundles_post_ra>
// kernel: feature_extractor_forward.1
= control target key start
LH: loop header
LB: loop body
LE: loop exit
PB: predicated region body
PF: predicated region fallthrough
CT: control target
= control target key end

     0   :  { %8 = vsyncpa [#allocation3], 0  ;;  %s2170_s0 = inlined_call_operand.vmem [shape: bf16[2,240,128], index: 0, kind: input, shape index: {}]   ;;  %s2171_s1 = inlined_call_operand.vmem [shape: bf16[3,128,128], index: 1, kind: input, shape index: {}]   ;;  %s2172_s2 = inlined_call_operand.vmem [shape: f32[1,128], index: 2, kind: input, shape index: {}]   ;;  %s2173_s3 = inlined_call_operand.hbm [shape: f32[2,1,128], index: 3, kind: output, shape index: {}]  }
   0x1   :  { %10 = vsyncpa [#allocation3 + $0x1], 0  ;;  %s1696_s12 = smov 0   ;;  %s1698_s13 = smov 0  }
   0x2   :  { %s1700_s14 = smov 0   ;;  %s1702_s15 = smov 0  }
   0x3 LB: > { %s1717_s16 = sadd.s32 4294967295, %s1669_s15   ;;  %s1154_s17 = sadd.s32 4294967294, %s1669_s15   ;;  %s1669_s15 = sphi %s1702_s15, %s2181_s15   ;;  %s1665_s14 = sphi %s1700_s14, %s2180_s14   ;;  %s1661_s13 = sphi %s1698_s13, %s2179_s13   ;;  %s1657_s12 = sphi %s1696_s12, %s2178_s12  }
   0x4   : > { %s1721_s18 = sadd.s32 1, %s1669_s15   ;;  %s91_s19 = sadd.s32 1, %s1665_s14 }
   0x5   : > { %s88_s20 = ssub.s32 %s1669_s15, %s1721_s18  ;;  %p101_p0 = scmp.ne.s32.totalorder %s1665_s14, %s1661_s13 }
   0x6   : > { %p89_p1 = scmp.eq.s32.totalorder %s88_s20, 0  ;;  %p102_p2 = scmp.eq.s32.totalorder %s1717_s16, 1 }
   0x7   : > { %p107_p3 = scmp.ne.s32.totalorder %s1661_s13, %s1657_s12  ;;  %p108_p4 = scmp.eq.s32.totalorder %s1154_s17, 1 }
   0x8   : > { %s1732_s21 = scalar_select %p89_p1, %s1665_s14, %s91_s19  }
   0x9   : > { %p1734_p5 = por %p102_p2, %p101_p0  ;;  %p1738_p6 = por %p108_p4, %p107_p3 }
   0xa   : > { %p1157_p7 = scmp.ge.s32.totalorder %s1669_s15, 1  ;;  %p140_p8 = scmp.lt.s32.totalorder %s1669_s15, 3 }
   0xc   : > { %p141_p9 = pnand %p1157_p7, %p140_p8 }
   0xd   : > { %v1568_v0 = vld [vmem:[%s2171_s1 + $0x40] sm:$0xff] (!%p141_p9)   ;;  %v1671_v1 = vmov (!%p141_p9), 0.0   ;;  %v1569_v2 = vld [vmem:[%s2171_s1 + $0x48] sm:$0xff] (!%p141_p9)   ;;  %p163_p10 = scmp.lt.s32.totalorder (!%p141_p9), %s1717_s16, 1  ;;  %vm1672_vm0 = vmmov (!%p141_p9), 0   ;;  %v1570_v3 = vld [vmem:[%s2171_s1 + $0x50] sm:$0xff] (!%p141_p9)   ;;  %v992_v57 = vlaneseq (!%p141_p9) }
   0xe   : > { %144 = sbr.rel (%p141_p9) target bundleno = 651 (0x28b), region = 32  ;;  %1304 = vmatprep.subr.bf16.mxu0 (!%p141_p9), %v1671_v1  ;;  %1508 = vmatprep.subr.bf16.mxu1 (!%p141_p9), %v1671_v1  ;;  %v1571_v4 = vld [vmem:[%s2171_s1 + $0x58] sm:$0xff] (!%p141_p9)   ;;  %v1572_v5 = vld [vmem:[%s2171_s1 + $0x60] sm:$0xff] (!%p141_p9)   ;;  %v1573_v6 = vld [vmem:[%s2171_s1 + $0x68] sm:$0xff] (!%p141_p9)   ;;  %v1673_v40 = vmov (!%p141_p9), 0   ;;  %vm1040_vm10 = vcmask (!%p141_p9), 654336  }
   0xf   : > { %1305 = vmatpush3.bf16.msra.mxu0 (!%p141_p9), %v1568_v0  ;;  %1516 = vmatpush3.bf16.msra.mxu1 (!%p141_p9), %v1568_v0  ;;  %v1574_v7 = vld [vmem:[%s2171_s1 + $0x70] sm:$0xff] (!%p141_p9)   ;;  %v1575_v8 = vld [vmem:[%s2171_s1 + $0x78] sm:$0xff] (!%p141_p9)   ;;  %v1578_v11 = vld [vmem:[%s2171_s1 + $0x80] sm:$0xff] (!%p141_p9)   ;;  %v993_v58 = vand.u32 (!%p141_p9), 127, %v992_v57  ;;  %v996_v59 = vshrl.u32 (!%p141_p9), %v992_v57, 7  ;;  %s161_s26 = sand.u32 (!%p141_p9), 1, %s1661_s13  }
  0x10   : > { %1306 = vmatprep.subr.bf16.mxu0 (!%p141_p9), %v1671_v1  ;;  %1509 = vmatprep.subr.bf16.mxu1 (!%p141_p9), %v1671_v1  ;;  %v1581_v12 = vld [vmem:[%s2171_s1] sm:$0xff] (!%p141_p9)   ;;  %v1582_v13 = vld [vmem:[%s2171_s1 + $0x88] sm:$0xff] (!%p141_p9)   ;;  %v1586_v17 = vld [vmem:[%s2171_s1 + $0x90] sm:$0xff] (!%p141_p9)   ;;  %s1238_s27 = sshll.u32 (!%p141_p9), %s1717_s16, 4  ;;  %s1087_s6 = scalar_lea.sflag (!%p141_p9), [#allocation3], %s161_s26 }
  0x11   : > { %1320 = vmatprep.mubr.msk.bf16.mxu0 (!%p141_p9), %vm1672_vm0, %v1671_v1  ;;  %1348 = vmatprep.mubr.msk.bf16.mxu1 (!%p141_p9), %vm1672_vm0, %v1671_v1  ;;  %v1585_v14 = vld [vmem:[%s2171_s1 + $0x8] sm:$0xff] (!%p141_p9)   ;;  %v1587_v18 = vld [vmem:[%s2171_s1 + $0x10] sm:$0xff] (!%p141_p9)   ;;  %v1590_v19 = vld [vmem:[%s2171_s1 + $0x98] sm:$0xff] (!%p141_p9)   ;;  %v994_v62 = vadd.s32 (!%p141_p9), 128, %v993_v58  ;;  %v997_v63 = vmul.u32 (!%p141_p9), 240, %v996_v59  ;;  %s2128_s5 = scalar_lea.hbm (!%p141_p9), %s2173_s3, %s1238_s27  ;;  %s1675_s8 = smov (!%p141_p9), [#allocation2]  }
  0x12   : > { %v1591_v20 = vld [vmem:[%s2171_s1 + $0x18] sm:$0xff] (!%p141_p9)   ;;  %v1594_v23 = vld [vmem:[%s2171_s1 + $0x20] sm:$0xff] (!%p141_p9)   ;;  %v1596_v25 = vld [vmem:[%s2171_s1 + $0x28] sm:$0xff] (!%p141_p9)   ;;  %s1611_s9 = sshll.u32 (!%p141_p9), %s1675_s8, 4  ;;  %s1612_s9 = int_to_ptr.vmem [resolvable:$false] %s1611_s9 }
  0x13   : > { %1307 = vmatpush3.bf16.msra.mxu0 (!%p141_p9), %v1569_v2  ;;  %1517 = vmatpush3.bf16.msra.mxu1 (!%p141_p9), %v1569_v2  ;;  %v1595_v24 = vld [vmem:[%s2171_s1 + $0xa0] sm:$0xff] (!%p141_p9)   ;;  %v1599_v26 = vld [vmem:[%s2171_s1 + $0xa8] sm:$0xff] (!%p141_p9)   ;;  %v1600_v29 = vld [vmem:[%s2171_s1 + $0x30] sm:$0xff] (!%p141_p9)   ;;  %s1613_s10 = scalar_lea.vmem (!%p141_p9), %s1612_s9, 32 }
  0x14   : > { %1308 = vmatprep.subr.bf16.mxu0 (!%p141_p9), %v1671_v1  ;;  %1510 = vmatprep.subr.bf16.mxu1 (!%p141_p9), %v1671_v1  ;;  %v1602_v30 = vld [vmem:[%s2171_s1 + $0xb0] sm:$0xff] (!%p141_p9)   ;;  %v1601_v31 = vld [vmem:[%s2171_s1 + $0x38] sm:$0xff] (!%p141_p9)  }
  0x15   : > { %s164_s28 = scalar_select %p163_p10, %s1717_s16, 1  ;;  %v1605_v32 = vld [vmem:[%s2171_s1 + $0xb8] sm:$0xff]  }
  0x17   : > { %s1524_s4 = smul.u32 120, %s164_s28  ;;  %1309 = vmatpush3.bf16.msra.mxu0 %v1570_v3  ;;  %1518 = vmatpush3.bf16.msra.mxu1 %v1570_v3  ;;  %s162_s28 = scalar_lea.vmem [#allocation2], %s161_s26 }
  0x18   : > { %1310 = vmatprep.subr.bf16.mxu0 %v1671_v1  ;;  %1511 = vmatprep.subr.bf16.mxu1 %v1671_v1  ;;  %s1099_s29 = sshll.u32 %s162_s28, 4  ;;  %s2130_s29 = int_to_ptr.vmem [resolvable:$true] %s1099_s29 }
  0x19   : > { %s1768_s7 = scalar_lea.vmem %s2170_s0, %s1524_s4  ;;  %s1607_s16 = scalar_lea.vmem %s2130_s29, 16 }
  0x1a   : > { %v1796_v9 = vld [vmem:[%s1768_s7 + $0x8] sm:$0xff]   ;;  %v1799_v10 = vld [vmem:[%s1768_s7 + $0x40] sm:$0xff]   ;;  %v1822_v15 = vld [vmem:[%s1768_s7 + $0x10] sm:$0xff]   ;;  %p1608_p11 = scmp.ne.s32.totalorder %s2130_s29, %s1607_s16  ;;  %p1614_p0 = scmp.lt.s32.totalorder %s2130_s29, %s1612_s9 }
  0x1b   : > { %1311 = vmatpush3.bf16.msra.mxu0 %v1571_v4  ;;  %1519 = vmatpush3.bf16.msra.mxu1 %v1571_v4  ;;  %v1827_v16 = vld [vmem:[%s1768_s7 + $0x48] sm:$0xff]   ;;  %v1852_v21 = vld [vmem:[%s1768_s7 + $0x18] sm:$0xff]   ;;  %v1855_v22 = vld [vmem:[%s1768_s7 + $0x50] sm:$0xff]   ;;  %p1615_p1 = scmp.lt.s32.totalorder %s1613_s10, %s1607_s16 }
  0x1c   : > { %1312 = vmatprep.subr.bf16.mxu0 %v1671_v1  ;;  %1512 = vmatprep.subr.bf16.mxu1 %v1671_v1  ;;  %v1588_v27 = vld [vmem:[%s1768_s7 + $0x20] sm:$0xff]   ;;  %v1881_v28 = vld [vmem:[%s1768_s7 + $0x58] sm:$0xff]   ;;  %v1592_v33 = vld [vmem:[%s1768_s7 + $0x28] sm:$0xff]   ;;  %p1609_p12 = pnand %p1608_p11, %p1734_p5 }
  0x1d   : > { %v1906_v34 = vld [vmem:[%s1768_s7 + $0x60] sm:$0xff]   ;;  %v1597_v35 = vld [vmem:[%s1768_s7 + $0x30] sm:$0xff]   ;;  %v1598_v36 = vld [vmem:[%s1768_s7 + $0x68] sm:$0xff]   ;;  %p1616_p2 = por %p1615_p1, %p1614_p0 }
  0x1e   : > { %v1603_v37 = vld [vmem:[%s1768_s7 + $0x38] sm:$0xff]   ;;  %v1604_v38 = vld [vmem:[%s1768_s7] sm:$0xff]   ;;  %v1606_v39 = vld [vmem:[%s1768_s7 + $0x70] sm:$0xff]   ;;  %p1610_p13 = pneg %p1609_p12 }
  0x1f   : > { %1313 = vmatpush3.bf16.msra.mxu0 %v1572_v5  ;;  %1520 = vmatpush3.bf16.msra.mxu1 %v1572_v5  ;;  %v999_v5 = vsub.s32 %v994_v62, %v997_v63 }
  0x20   : > { %1314 = vmatprep.subr.bf16.mxu0 %v1671_v1  ;;  %1513 = vmatprep.subr.bf16.mxu1 %v1671_v1  ;;  %p1617_p3 = pnand %p1616_p2, %p1610_p13 }
  0x21   : > { %vm1013_vm1 = vcmp.lt.s32.totalorder %v999_v5, 0  ;;  %vm1001_vm5 = vcmp.ge.s32.totalorder %v999_v5, 0  ;;  %vm1003_vm6 = vcmp.lt.s32.totalorder %v999_v5, 208 }
  0x22   : > { %vm1005_vm7 = vmand %vm1001_vm5, %vm1003_vm6 }
  0x23   : > { %1315 = vmatpush3.bf16.msra.mxu0 %v1573_v6  ;;  %1521 = vmatpush3.bf16.msra.mxu1 %v1573_v6 }
  0x24   : > { %1316 = vmatprep.subr.bf16.mxu0 %v1671_v1  ;;  %1514 = vmatprep.subr.bf16.mxu1 %v1671_v1 }
  0x27   : > { %1317 = vmatpush3.bf16.msra.mxu0 %v1574_v7  ;;  %1522 = vmatpush3.bf16.msra.mxu1 %v1574_v7 }
  0x28   : > { %1318 = vmatprep.subr.bf16.mxu0 %v1671_v1  ;;  %1515 = vmatprep.subr.bf16.mxu1 %v1671_v1 }
  0x2b   : > { %1319 = vmatpush3.bf16.msra.mxu0 %v1575_v8  ;;  %1523 = vmatpush3.bf16.msra.mxu1 %v1575_v8  ;;  %v1014_v8 = vsub.s32 0, %v999_v5 }
  0x2c   : > { %1440 = vmatprep.subr.bf16.mxu0 %v1671_v1  ;;  %1372 = vmatprep.subr.bf16.mxu1 %v1671_v1 }
  0x2e   : > { %1321 = vmatmul.mubr.bf16.vlgmr.msra.gmra.mrb[0].mxu0 %v1796_v9  ;;  %1349 = vmatmul.mubr.bf16.vlgmr.msra.gmra.mrb[0].mxu1 %v1799_v10 }
  0x2f   : > { %1441 = vmatpush3.bf16.msra.mxu0 %v1578_v11  ;;  %1324 = vmatprep.mubr.msk.bf16.mxu0 %vm1672_vm0, %v1671_v1 }
  0x30   : > { %1352 = vmatprep.mubr.msk.bf16.mxu1 %vm1672_vm0, %v1671_v1  ;;  %1373 = vmatpush3.bf16.msra.mxu1 %v1581_v12 }
  0x31   : > { %1442 = vmatprep.subr.bf16.mxu0 %v1671_v1  ;;  %1374 = vmatprep.subr.bf16.mxu1 %v1671_v1 }
  0x33   : > { %1443 = vmatpush3.bf16.msra.mxu0 %v1582_v13 }
  0x34   : > { %1375 = vmatpush3.bf16.msra.mxu1 %v1585_v14  ;;  %1444 = vmatprep.subr.bf16.mxu0 %v1671_v1 }
  0x35   : > { %1376 = vmatprep.subr.bf16.mxu1 %v1671_v1 }
  0x36   : > { %1325 = vmatmul.mubr.bf16.gmra.mrb[4].mxu0 %v1822_v15  ;;  %1353 = vmatmul.mubr.bf16.gmra.mrb[4].mxu1 %v1827_v16 }
  0x37   : > { %1328 = vmatprep.mubr.msk.bf16.mxu0 %vm1672_vm0, %v1671_v1  ;;  %1356 = vmatprep.mubr.msk.bf16.mxu1 %vm1672_vm0, %v1671_v1 }
  0x38   : > { %1445 = vmatpush3.bf16.msra.mxu0 %v1586_v17  ;;  %1377 = vmatpush3.bf16.msra.mxu1 %v1587_v18 }
  0x39   : > { %1446 = vmatprep.subr.bf16.mxu0 %v1671_v1  ;;  %1378 = vmatprep.subr.bf16.mxu1 %v1671_v1 }
  0x3c   : > { %1447 = vmatpush3.bf16.msra.mxu0 %v1590_v19  ;;  %1379 = vmatpush3.bf16.msra.mxu1 %v1591_v20 }
  0x3d   : > { %1380 = vmatprep.subr.bf16.mxu1 %v1671_v1  ;;  %1448 = vmatprep.subr.bf16.mxu0 %v1671_v1 }
  0x3e   : > { %1329 = vmatmul.mubr.bf16.gmra.mrb[8].mxu0 %v1852_v21  ;;  %1357 = vmatmul.mubr.bf16.gmra.mrb[8].mxu1 %v1855_v22 }
  0x3f   : > { %1332 = vmatprep.mubr.msk.bf16.mxu0 %vm1672_vm0, %v1671_v1  ;;  %1360 = vmatprep.mubr.msk.bf16.mxu1 %vm1672_vm0, %v1671_v1 }
  0x40   : > { %1381 = vmatpush3.bf16.msra.mxu1 %v1594_v23  ;;  %1449 = vmatpush3.bf16.msra.mxu0 %v1595_v24 }
  0x41   : > { %1382 = vmatprep.subr.bf16.mxu1 %v1671_v1  ;;  %1450 = vmatprep.subr.bf16.mxu0 %v1671_v1 }
  0x44   : > { %1383 = vmatpush3.bf16.msra.mxu1 %v1596_v25  ;;  %1451 = vmatpush3.bf16.msra.mxu0 %v1599_v26 }
  0x45   : > { %1384 = vmatprep.subr.bf16.mxu1 %v1671_v1  ;;  %1452 = vmatprep.subr.bf16.mxu0 %v1671_v1 }
  0x46   : > { %1333 = vmatmul.mubr.bf16.gmra.mrb[12].mxu0 %v1588_v27  ;;  %1361 = vmatmul.mubr.bf16.gmra.mrb[12].mxu1 %v1881_v28 }
  0x47   : > { %1336 = vmatprep.mubr.msk.bf16.mxu0 %vm1672_vm0, %v1671_v1  ;;  %1364 = vmatprep.mubr.msk.bf16.mxu1 %vm1672_vm0, %v1671_v1 }
  0x48   : > { %1385 = vmatpush3.bf16.msra.mxu1 %v1600_v29  ;;  %1453 = vmatpush3.bf16.msra.mxu0 %v1602_v30 }
  0x49   : > { %1386 = vmatprep.subr.bf16.mxu1 %v1671_v1  ;;  %1454 = vmatprep.subr.bf16.mxu0 %v1671_v1 }
  0x4c   : > { %1387 = vmatpush3.bf16.msra.mxu1 %v1601_v31  ;;  %1455 = vmatpush3.bf16.msra.mxu0 %v1605_v32 }
  0x4d   : > { %1044 = vmatprep.subr.bf16.mxu1 %v1673_v40 }
  0x4e   : > { %1337 = vmatmul.mubr.bf16.gmra.mrb[16].mxu0 %v1592_v33  ;;  %1365 = vmatmul.mubr.bf16.gmra.mrb[16].mxu1 %v1906_v34 }
  0x4f   : > { %1340 = vmatprep.mubr.msk.bf16.mxu0 %vm1672_vm0, %v1671_v1  ;;  %1368 = vmatprep.mubr.msk.bf16.mxu1 %vm1672_vm0, %v1671_v1 }
  0x56   : > { %1341 = vmatmul.mubr.bf16.gmra.mrb[20].mxu0 %v1597_v35  ;;  %1369 = vmatmul.mubr.bf16.gmra.mrb[20].mxu1 %v1598_v36 }
  0x57   : > { %1344 = vmatprep.mubr.msk.bf16.mxu0 %vm1672_vm0, %v1671_v1  ;;  %1388 = vmatprep.mubr.msk.bf16.mxu1 %vm1672_vm0, %v1671_v1 }
  0x5e   : > { %1345 = vmatmul.mubr.bf16.gmra.mrb[24].mxu0 %v1603_v37  ;;  %1389 = vmatmul.mubr.bf16.vlgmr.msra.gmra.mrb[24].mxu1 %v1604_v38 }
  0x5f   : > { %1392 = vmatprep.mubr.msk.bf16.mxu1 %vm1672_vm0, %v1671_v1  ;;  %1456 = vmatprep.mubr.msk.bf16.mxu0 %vm1672_vm0, %v1671_v1 }
  0x66   : > { %1393 = vmatmul.mubr.bf16.gmra.mrb[28].mxu1 %v1796_v9  ;;  %1457 = vmatmul.mubr.bf16.vlgmr.msra.gmra.mrb[28].mxu0 %v1822_v15  ;;  %v2012_v9 = vsub.s32 %v993_v58, %v997_v63 }
  0x67   : > { %1396 = vmatprep.mubr.msk.bf16.mxu1 %vm1672_vm0, %v1671_v1  ;;  %1460 = vmatprep.mubr.msk.bf16.mxu0 %vm1672_vm0, %v1671_v1 }
  0x68   : > { %vm1006_vm11 = vcmp.lt.s32.totalorder %v2012_v9, 0  ;;  %vm1000_vm15 = vcmp.ge.s32.totalorder %v2012_v9, 0 }
  0x6e   : > { %1397 = vmatmul.mubr.bf16.gmra.mrb[32].mxu1 %v1822_v15  ;;  %1461 = vmatmul.mubr.bf16.gmra.mrb[32].mxu0 %v1852_v21 }
  0x6f   : > { %1400 = vmatprep.mubr.msk.bf16.mxu1 %vm1672_vm0, %v1671_v1  ;;  %1464 = vmatprep.mubr.msk.bf16.mxu0 %vm1672_vm0, %v1671_v1 }
  0x76   : > { %1401 = vmatmul.mubr.bf16.gmra.mrb[36].mxu1 %v1852_v21  ;;  %1465 = vmatmul.mubr.bf16.gmra.mrb[36].mxu0 %v1588_v27 }
  0x77   : > { %1404 = vmatprep.mubr.msk.bf16.mxu1 %vm1672_vm0, %v1671_v1  ;;  %1468 = vmatprep.mubr.msk.bf16.mxu0 %vm1672_vm0, %v1671_v1 }
  0x7e   : > { %1405 = vmatmul.mubr.bf16.gmra.mrb[40].mxu1 %v1588_v27  ;;  %1469 = vmatmul.mubr.bf16.gmra.mrb[40].mxu0 %v1592_v33 }
  0x7f   : > { %1408 = vmatprep.mubr.msk.bf16.mxu1 %vm1672_vm0, %v1671_v1  ;;  %1472 = vmatprep.mubr.msk.bf16.mxu0 %vm1672_vm0, %v1671_v1 }
  0x86   : > { %1409 = vmatmul.mubr.bf16.gmra.mrb[44].mxu1 %v1592_v33  ;;  %1473 = vmatmul.mubr.bf16.gmra.mrb[44].mxu0 %v1597_v35 }
  0x87   : > { %1412 = vmatprep.mubr.msk.bf16.mxu1 %vm1672_vm0, %v1671_v1  ;;  %1476 = vmatprep.mubr.msk.bf16.mxu0 %vm1672_vm0, %v1671_v1 }
  0x8e   : > { %1413 = vmatmul.mubr.bf16.gmra.mrb[48].mxu1 %v1597_v35  ;;  %1477 = vmatmul.mubr.bf16.gmra.mrb[48].mxu0 %v1603_v37 }
  0x8f   : > { %1416 = vmatprep.mubr.msk.bf16.mxu1 %vm1672_vm0, %v1671_v1  ;;  %1480 = vmatprep.mubr.msk.bf16.mxu0 %vm1672_vm0, %v1671_v1 }
  0x96   : > { %1417 = vmatmul.mubr.bf16.gmra.mrb[52].mxu1 %v1603_v37  ;;  %1481 = vmatmul.mubr.bf16.gmra.mrb[52].mxu0 %v1799_v10 }
  0x97   : > { %1420 = vmatprep.mubr.msk.bf16.mxu1 %vm1672_vm0, %v1671_v1  ;;  %1484 = vmatprep.mubr.msk.bf16.mxu0 %vm1672_vm0, %v1671_v1 }
  0x9e   : > { %1421 = vmatmul.mubr.bf16.gmra.mrb[56].mxu1 %v1799_v10  ;;  %1485 = vmatmul.mubr.bf16.gmra.mrb[56].mxu0 %v1827_v16  ;;  %v1232_v10 = vmin.u32 %v1014_v8, %v999_v5 }
  0x9f   : > { %1424 = vmatprep.mubr.msk.bf16.mxu1 %vm1672_vm0, %v1671_v1  ;;  %1488 = vmatprep.mubr.msk.bf16.mxu0 %vm1672_vm0, %v1671_v1 }
  0xa0   : > { %v1017_v13 = vand.u32 15, %v1232_v10 }
  0xa2   : > { %v1018_v18 = vsub.s32 0, %v1017_v13 }
  0xa4   : > { %v1019_v21 = vsel %vm1013_vm1, %v1018_v18, %v1017_v13 }
  0xa5   : > { %vm1021_vm2 = vcmp.ne.s32.totalorder %v1019_v21, 0  ;;  %vm1023_vm3 = vcmp.lt.s32.totalorder %v1019_v21, 0 }
  0xa6   : > { %1425 = vmatmul.mubr.bf16.gmra.mrb[60].mxu1 %v1827_v16  ;;  %1489 = vmatmul.mubr.bf16.gmra.mrb[60].mxu0 %v1855_v22  ;;  %vm1025_vm4 = vmand %vm1023_vm3, %vm1021_vm2 }
  0xa7   : > { %1428 = vmatprep.mubr.msk.bf16.mxu1 %vm1672_vm0, %v1671_v1  ;;  %1492 = vmatprep.mubr.msk.bf16.mxu0 %vm1672_vm0, %v1671_v1 }
  0xae   : > { %1429 = vmatmul.mubr.bf16.gmra.mrb[64].mxu1 %v1855_v22  ;;  %1493 = vmatmul.mubr.bf16.gmra.mrb[64].mxu0 %v1881_v28  ;;  %v1027_v22 = vadd.s32 16, %v1019_v21 }
  0xaf   : > { %1432 = vmatprep.mubr.msk.bf16.mxu1 %vm1672_vm0, %v1671_v1  ;;  %1496 = vmatprep.mubr.msk.bf16.mxu0 %vm1672_vm0, %v1671_v1 }
  0xb0   : > { %v1029_v23 = vsel %vm1025_vm4, %v1027_v22, %v1019_v21 }
  0xb1   : > { %vm1031_vm8 = vcmp.lt.s32.totalorder %v1029_v23, 13 }
  0xb2   : > { %vm1033_vm9 = vmand %vm1005_vm7, %vm1031_vm8 }
  0xb3   : > { %v1234_v30 = vsel %vm1033_vm9, 1.0, %v1671_v1 }
  0xb4   : > { %v1039_v33 = vpack.c.bf16 %v1234_v30, %v1234_v30 }
  0xb6   : > { %1433 = vmatmul.mubr.bf16.gmra.mrb[68].mxu1 %v1881_v28  ;;  %1497 = vmatmul.mubr.bf16.gmra.mrb[68].mxu0 %v1906_v34 }
  0xb7   : > { %1436 = vmatprep.mubr.msk.bf16.mxu1 %vm1672_vm0, %v1671_v1  ;;  %1500 = vmatprep.mubr.msk.bf16.mxu0 %vm1672_vm0, %v1671_v1 }
  0xbe   : > { %1437 = vmatmul.mubr.bf16.gmra.mrb[72].mxu1 %v1906_v34  ;;  %1501 = vmatmul.mubr.bf16.gmra.mrb[72].mxu0 %v1598_v36 }
  0xbf   : > { %1504 = vmatprep.mubr.msk.bf16.mxu0 %vm1672_vm0, %v1671_v1  ;;  %1235 = vmatprep.mubr.msk.bf16.mxu1 %vm1040_vm10, %v1039_v33  ;;  %vm1002_vm0 = vcmp.lt.s32.totalorder %v2012_v9, 208 }
  0xc0   : > { %vm1004_vm1 = vmand %vm1000_vm15, %vm1002_vm0 }
  0xc6   : > { %1505 = vmatmul.mubr.bf16.gmra.mrb[76].mxu0 %v1606_v39 }
 0x101   : > { %v1988_v41 = vpop.f32.mrb[0].mxu0  ;;  %v1990_v42 = vpop.f32.mrb[0].mxu1 }
 0x102   : > { %v1322_v43 = vpop.f32.mrb[1].mxu0  ;;  %v1350_v44 = vpop.f32.mrb[1].mxu1 }
 0x103   : > { %v1992_v45 = vpop.f32.mrb[2].mxu0  ;;  %v1994_v46 = vpop.f32.mrb[2].mxu1 }
 0x104   : > { %v1323_v47 = vpop.f32.mrb[3].mxu0  ;;  %v1351_v48 = vpop.f32.mrb[3].mxu1 }
 0x109   : > { %v1996_v49 = vpop.f32.mrb[4].mxu0  ;;  %v1998_v50 = vpop.f32.mrb[4].mxu1 }
 0x10a   : > { %v1326_v51 = vpop.f32.mrb[5].mxu0  ;;  %v1354_v52 = vpop.f32.mrb[5].mxu1 }
 0x10b   : > { %v2000_v53 = vpop.f32.mrb[6].mxu0  ;;  %v2002_v54 = vpop.f32.mrb[6].mxu1 }
 0x10c   : > { %v1327_v55 = vpop.f32.mrb[7].mxu0  ;;  %v1355_v56 = vpop.f32.mrb[7].mxu1 }
 0x111   : > { %v2004_v60 = vpop.f32.mrb[8].mxu0  ;;  %v2006_v61 = vpop.f32.mrb[8].mxu1 }
 0x112   : > { %v1330_v0 = vpop.f32.mrb[9].mxu0  ;;  %v1358_v2 = vpop.f32.mrb[9].mxu1 }
 0x113   : > { %v2008_v3 = vpop.f32.mrb[10].mxu0  ;;  %v2010_v4 = vpop.f32.mrb[10].mxu1  ;;  %v2048_v0 = vld [vmem:[%s2172_s2] ss:$0 sm:$0xff] }
 0x114   : > { %v1331_v6 = vpop.f32.mrb[11].mxu0  ;;  %v1359_v7 = vpop.f32.mrb[11].mxu1 }
 0x119   : > { %v2014_v11 = vpop.f32.mrb[12].mxu0  ;;  %v2016_v12 = vpop.f32.mrb[12].mxu1 }
 0x11a   : > { %v1334_v14 = vpop.f32.mrb[13].mxu0  ;;  %v1362_v15 = vpop.f32.mrb[13].mxu1 }
 0x11b   : > { %v2018_v16 = vpop.f32.mrb[14].mxu0  ;;  %v2020_v17 = vpop.f32.mrb[14].mxu1 }
 0x11c   : > { %v1335_v19 = vpop.f32.mrb[15].mxu0  ;;  %v1363_v20 = vpop.f32.mrb[15].mxu1 }
 0x121   : > { %v2022_v24 = vpop.f32.mrb[16].mxu0  ;;  %v2024_v25 = vpop.f32.mrb[16].mxu1 }
 0x122   : > { %v1338_v26 = vpop.f32.mrb[17].mxu0  ;;  %v1366_v27 = vpop.f32.mrb[17].mxu1 }
 0x123   : > { %v2026_v28 = vpop.f32.mrb[18].mxu0  ;;  %v2028_v29 = vpop.f32.mrb[18].mxu1 }
 0x124   : > { %v1339_v31 = vpop.f32.mrb[19].mxu0  ;;  %v1367_v32 = vpop.f32.mrb[19].mxu1 }
 0x129   : > { %v2031_v34 = vpop.f32.mrb[20].mxu0  ;;  %v2033_v35 = vpop.f32.mrb[20].mxu1 }
 0x12a   : > { %v1342_v36 = vpop.f32.mrb[21].mxu0  ;;  %v1370_v37 = vpop.f32.mrb[21].mxu1 }
 0x12b   : > { %v2035_v38 = vpop.f32.mrb[22].mxu0  ;;  %v2037_v39 = vpop.f32.mrb[22].mxu1 }
 0x12c   : > { %v1343_v43 = vpop.f32.mrb[23].mxu0  ;;  %v1371_v44 = vpop.f32.mrb[23].mxu1 }
 0x131   : > { %v2039_v47 = vpop.f32.mrb[24].mxu0  ;;  %v583_v1 = vpop.f32.mrb[24].mxu1 }
 0x132   : > { %v584_v48 = vadd.f32 %v583_v1, %v1988_v41  ;;  %v1346_v51 = vpop.f32.mrb[25].mxu0  ;;  %v1390_v52 = vpop.f32.mrb[25].mxu1 }
 0x133   : > { %v2042_v55 = vpop.f32.mrb[26].mxu0  ;;  %v586_v56 = vpop.f32.mrb[26].mxu1 }
 0x134   : > { %v587_v57 = vadd.f32 %v586_v56, %v1992_v45  ;;  %v1347_v58 = vpop.f32.mrb[27].mxu0  ;;  %v1391_v59 = vpop.f32.mrb[27].mxu1 }
 0x139   : > { %v591_v62 = vpop.f32.mrb[28].mxu1  ;;  %v791_v63 = vpop.f32.mrb[28].mxu0 }
 0x13a   : > { %v592_v2 = vadd.f32 %v591_v62, %v1996_v49  ;;  %v894_v5 = vadd.f32 %v791_v63, %v584_v48  ;;  %v1394_v41 = vpop.f32.mrb[29].mxu1  ;;  %v1458_v6 = vpop.f32.mrb[29].mxu0 }
 0x13b   : > { %v594_v7 = vpop.f32.mrb[30].mxu1  ;;  %v794_v8 = vpop.f32.mrb[30].mxu0 }
 0x13c   : > { %v927_v10 = vadd.f32 %v2048_v0, %v894_v5  ;;  %v595_v45 = vadd.f32 %v594_v7, %v2000_v53  ;;  %v895_v13 = vadd.f32 %v794_v8, %v587_v57  ;;  %v1459_v14 = vpop.f32.mrb[31].mxu0  ;;  %v1395_v15 = vpop.f32.mrb[31].mxu1 }
 0x13e   : > { %v928_v18 = vadd.f32 %v2048_v0, %v895_v13  ;;  %v953_v19 = vmax.f32 %v927_v10, 0.0 }
 0x140   : > { %v954_v20 = vmax.f32 %v928_v18, 0.0 }
 0x141   : > { %v599_v21 = vpop.f32.mrb[32].mxu1  ;;  %v799_v22 = vpop.f32.mrb[32].mxu0 }
 0x142   : > { %v979_v23 = vpack.c.bf16 %v954_v20, %v953_v19  ;;  %v600_v49 = vadd.f32 %v599_v21, %v2004_v60  ;;  %v896_v26 = vadd.f32 %v799_v22, %v592_v2  ;;  %v1398_v27 = vpop.f32.mrb[33].mxu1  ;;  %v1462_v30 = vpop.f32.mrb[33].mxu0 }
 0x143   : > { %v602_v31 = vpop.f32.mrb[34].mxu1  ;;  %v802_v32 = vpop.f32.mrb[34].mxu0 }
 0x144   : > { %v929_v33 = vadd.f32 %v2048_v0, %v896_v26  ;;  %v603_v53 = vadd.f32 %v602_v31, %v2008_v3  ;;  %v897_v36 = vadd.f32 %v802_v32, %v595_v45  ;;  %v1463_v37 = vpop.f32.mrb[35].mxu0  ;;  %1045 = vmatpush1.bf16.msra.mxu1 %v979_v23  ;;  %v1399_v43 = vpop.f32.mrb[35].mxu1 }
 0x145   : > { %1046 = vmatprep.subr.bf16.mxu1 %v1673_v40 }
 0x146   : > { %v930_v44 = vadd.f32 %v2048_v0, %v897_v36  ;;  %v955_v1 = vmax.f32 %v929_v33, 0.0 }
 0x148   : > { %v956_v48 = vmax.f32 %v930_v44, 0.0 }
 0x149   : > { %v607_v60 = vpop.f32.mrb[36].mxu1  ;;  %v807_v51 = vpop.f32.mrb[36].mxu0 }
 0x14a   : > { %v980_v52 = vpack.c.bf16 %v956_v48, %v955_v1  ;;  %v608_v56 = vadd.f32 %v607_v60, %v2014_v11  ;;  %v898_v57 = vadd.f32 %v807_v51, %v600_v49  ;;  %v1402_v58 = vpop.f32.mrb[37].mxu1  ;;  %v1466_v59 = vpop.f32.mrb[37].mxu0 }
 0x14b   : > { %v610_v62 = vpop.f32.mrb[38].mxu1  ;;  %v810_v3 = vpop.f32.mrb[38].mxu0 }
 0x14c   : > { %v931_v63 = vadd.f32 %v2048_v0, %v898_v57  ;;  %v611_v2 = vadd.f32 %v610_v62, %v2018_v16  ;;  %v899_v5 = vadd.f32 %v810_v3, %v603_v53  ;;  %v1467_v41 = vpop.f32.mrb[39].mxu0  ;;  %1047 = vmatpush1.bf16.msra.mxu1 %v980_v52  ;;  %v1403_v6 = vpop.f32.mrb[39].mxu1 }
 0x14d   : > { %1048 = vmatprep.subr.bf16.mxu1 %v1673_v40 }
 0x14e   : > { %v932_v7 = vadd.f32 %v2048_v0, %v899_v5  ;;  %v957_v8 = vmax.f32 %v931_v63, 0.0 }
 0x150   : > { %v958_v10 = vmax.f32 %v932_v7, 0.0 }
 0x151   : > { %v615_v11 = vpop.f32.mrb[40].mxu1  ;;  %v815_v45 = vpop.f32.mrb[40].mxu0 }
 0x152   : > { %v981_v13 = vpack.c.bf16 %v958_v10, %v957_v8  ;;  %v616_v14 = vadd.f32 %v615_v11, %v2022_v24  ;;  %v900_v15 = vadd.f32 %v815_v45, %v608_v56  ;;  %v1406_v18 = vpop.f32.mrb[41].mxu1  ;;  %v1470_v19 = vpop.f32.mrb[41].mxu0 }
 0x153   : > { %v618_v20 = vpop.f32.mrb[42].mxu1  ;;  %v818_v16 = vpop.f32.mrb[42].mxu0 }
 0x154   : > { %v933_v21 = vadd.f32 %v2048_v0, %v900_v15  ;;  %v619_v22 = vadd.f32 %v618_v20, %v2026_v28  ;;  %v901_v23 = vadd.f32 %v818_v16, %v611_v2  ;;  %v1471_v49 = vpop.f32.mrb[43].mxu0  ;;  %1049 = vmatpush1.bf16.msra.mxu1 %v981_v13  ;;  %v1407_v26 = vpop.f32.mrb[43].mxu1 }
 0x155   : > { %1050 = vmatprep.subr.bf16.mxu1 %v1673_v40 }
 0x156   : > { %v934_v27 = vadd.f32 %v2048_v0, %v901_v23  ;;  %v959_v30 = vmax.f32 %v933_v21, 0.0 }
 0x158   : > { %v960_v31 = vmax.f32 %v934_v27, 0.0 }
 0x159   : > { %v623_v24 = vpop.f32.mrb[44].mxu1  ;;  %v823_v32 = vpop.f32.mrb[44].mxu0 }
 0x15a   : > { %v982_v33 = vpack.c.bf16 %v960_v31, %v959_v30  ;;  %v624_v53 = vadd.f32 %v623_v24, %v2031_v34  ;;  %v902_v36 = vadd.f32 %v823_v32, %v616_v14  ;;  %v1410_v37 = vpop.f32.mrb[45].mxu1  ;;  %v1474_v43 = vpop.f32.mrb[45].mxu0 }
 0x15b   : > { %v626_v44 = vpop.f32.mrb[46].mxu1  ;;  %v826_v28 = vpop.f32.mrb[46].mxu0 }
 0x15c   : > { %v935_v1 = vadd.f32 %v2048_v0, %v902_v36  ;;  %v627_v48 = vadd.f32 %v626_v44, %v2035_v38  ;;  %v903_v60 = vadd.f32 %v826_v28, %v619_v22  ;;  %v1475_v51 = vpop.f32.mrb[47].mxu0  ;;  %1051 = vmatpush1.bf16.msra.mxu1 %v982_v33  ;;  %v1411_v52 = vpop.f32.mrb[47].mxu1 }
 0x15d   : > { %1052 = vmatprep.subr.bf16.mxu1 %v1673_v40 }
 0x15e   : > { %v936_v56 = vadd.f32 %v2048_v0, %v903_v60  ;;  %v961_v57 = vmax.f32 %v935_v1, 0.0 }
 0x160   : > { %v962_v58 = vmax.f32 %v936_v56, 0.0 }
 0x161   : > { %v631_v34 = vpop.f32.mrb[48].mxu1  ;;  %v831_v59 = vpop.f32.mrb[48].mxu0 }
 0x162   : > { %v983_v62 = vpack.c.bf16 %v962_v58, %v961_v57  ;;  %v632_v3 = vadd.f32 %v631_v34, %v2039_v47  ;;  %v904_v63 = vadd.f32 %v831_v59, %v624_v53  ;;  %v1414_v2 = vpop.f32.mrb[49].mxu1  ;;  %v1478_v5 = vpop.f32.mrb[49].mxu0 }
 0x163   : > { %v634_v41 = vpop.f32.mrb[50].mxu1  ;;  %v834_v38 = vpop.f32.mrb[50].mxu0 }
 0x164   : > { %v937_v6 = vadd.f32 %v2048_v0, %v904_v63  ;;  %v635_v7 = vadd.f32 %v634_v41, %v2042_v55  ;;  %v905_v8 = vadd.f32 %v834_v38, %v627_v48  ;;  %v1479_v10 = vpop.f32.mrb[51].mxu0  ;;  %1053 = vmatpush1.bf16.msra.mxu1 %v983_v62  ;;  %v1415_v11 = vpop.f32.mrb[51].mxu1 }
 0x165   : > { %1054 = vmatprep.subr.bf16.mxu1 %v1673_v40 }
 0x166   : > { %v938_v45 = vadd.f32 %v2048_v0, %v905_v8  ;;  %v963_v13 = vmax.f32 %v937_v6, 0.0 }
 0x168   : > { %v964_v14 = vmax.f32 %v938_v45, 0.0 }
 0x169   : > { %v639_v47 = vpop.f32.mrb[52].mxu1  ;;  %v839_v15 = vpop.f32.mrb[52].mxu0 }
 0x16a   : > { %v984_v18 = vpack.c.bf16 %v964_v14, %v963_v13  ;;  %v640_v19 = vadd.f32 %v639_v47, %v1990_v42  ;;  %v906_v20 = vadd.f32 %v839_v15, %v632_v3  ;;  %v1418_v16 = vpop.f32.mrb[53].mxu1  ;;  %v1482_v21 = vpop.f32.mrb[53].mxu0 }
 0x16b   : > { %v642_v22 = vpop.f32.mrb[54].mxu1  ;;  %v842_v55 = vpop.f32.mrb[54].mxu0 }
 0x16c   : > { %v939_v23 = vadd.f32 %v2048_v0, %v906_v20  ;;  %v643_v49 = vadd.f32 %v642_v22, %v1994_v46  ;;  %v907_v26 = vadd.f32 %v842_v55, %v635_v7  ;;  %v1483_v27 = vpop.f32.mrb[55].mxu0  ;;  %1055 = vmatpush1.bf16.msra.mxu1 %v984_v18  ;;  %v1419_v30 = vpop.f32.mrb[55].mxu1 }
 0x16d   : > { %1056 = vmatprep.subr.bf16.mxu1 %v1673_v40 }
 0x16e   : > { %v940_v31 = vadd.f32 %v2048_v0, %v907_v26  ;;  %v965_v24 = vmax.f32 %v939_v23, 0.0 }
 0x170   : > { %v966_v32 = vmax.f32 %v940_v31, 0.0 }
 0x171   : > { %v647_v42 = vpop.f32.mrb[56].mxu1  ;;  %v847_v33 = vpop.f32.mrb[56].mxu0 }
 0x172   : > { %v985_v53 = vpack.c.bf16 %v966_v32, %v965_v24  ;;  %v648_v36 = vadd.f32 %v647_v42, %v1998_v50  ;;  %v908_v37 = vadd.f32 %v847_v33, %v640_v19  ;;  %v1422_v43 = vpop.f32.mrb[57].mxu1  ;;  %v1486_v44 = vpop.f32.mrb[57].mxu0 }
 0x173   : > { %v650_v28 = vpop.f32.mrb[58].mxu1  ;;  %v850_v46 = vpop.f32.mrb[58].mxu0 }
 0x174   : > { %v941_v1 = vadd.f32 %v2048_v0, %v908_v37  ;;  %v651_v48 = vadd.f32 %v650_v28, %v2002_v54  ;;  %v909_v60 = vadd.f32 %v850_v46, %v643_v49  ;;  %v1487_v51 = vpop.f32.mrb[59].mxu0  ;;  %1057 = vmatpush1.bf16.msra.mxu1 %v985_v53  ;;  %v1423_v52 = vpop.f32.mrb[59].mxu1 }
 0x175   : > { %1058 = vmatprep.subr.bf16.mxu1 %v1673_v40 }
 0x176   : > { %v942_v56 = vadd.f32 %v2048_v0, %v909_v60  ;;  %v967_v57 = vmax.f32 %v941_v1, 0.0 }
 0x178   : > { %v968_v58 = vmax.f32 %v942_v56, 0.0 }
 0x179   : > { %v655_v50 = vpop.f32.mrb[60].mxu1  ;;  %v855_v34 = vpop.f32.mrb[60].mxu0 }
 0x17a   : > { %v986_v59 = vpack.c.bf16 %v968_v58, %v967_v57  ;;  %v656_v62 = vadd.f32 %v655_v50, %v2006_v61  ;;  %v910_v3 = vadd.f32 %v855_v34, %v648_v36  ;;  %v1426_v63 = vpop.f32.mrb[61].mxu1  ;;  %v1490_v2 = vpop.f32.mrb[61].mxu0 }
 0x17b   : > { %v658_v5 = vpop.f32.mrb[62].mxu1  ;;  %v858_v54 = vpop.f32.mrb[62].mxu0 }
 0x17c   : > { %v943_v41 = vadd.f32 %v2048_v0, %v910_v3  ;;  %v659_v38 = vadd.f32 %v658_v5, %v2010_v4  ;;  %v911_v6 = vadd.f32 %v858_v54, %v651_v48  ;;  %v1491_v7 = vpop.f32.mrb[63].mxu0  ;;  %1059 = vmatpush1.bf16.msra.mxu1 %v986_v59  ;;  %v1427_v8 = vpop.f32.mrb[63].mxu1  ;;  %v1007_v4 = vsub.s32 0, %v2012_v9 }
 0x17d   : > { %1060 = vmatprep.subr.bf16.mxu1 %v1673_v40 }
 0x17e   : > { %v944_v10 = vadd.f32 %v2048_v0, %v911_v6  ;;  %v969_v11 = vmax.f32 %v943_v41, 0.0 }
 0x180   : > { %v970_v45 = vmax.f32 %v944_v10, 0.0 }
 0x181   : > { %v663_v61 = vpop.f32.mrb[64].mxu1  ;;  %v863_v13 = vpop.f32.mrb[64].mxu0 }
 0x182   : > { %v987_v14 = vpack.c.bf16 %v970_v45, %v969_v11  ;;  %v664_v47 = vadd.f32 %v663_v61, %v2016_v12  ;;  %v912_v15 = vadd.f32 %v863_v13, %v656_v62  ;;  %v1430_v18 = vpop.f32.mrb[65].mxu1  ;;  %v1494_v19 = vpop.f32.mrb[65].mxu0  ;;  %v1231_v12 = vmin.u32 %v1007_v4, %v2012_v9 }
 0x183   : > { %v666_v20 = vpop.f32.mrb[66].mxu1  ;;  %v866_v16 = vpop.f32.mrb[66].mxu0 }
 0x184   : > { %v945_v21 = vadd.f32 %v2048_v0, %v912_v15  ;;  %v667_v22 = vadd.f32 %v666_v20, %v2020_v17  ;;  %v913_v55 = vadd.f32 %v866_v16, %v659_v38  ;;  %v1495_v23 = vpop.f32.mrb[67].mxu0  ;;  %1061 = vmatpush1.bf16.msra.mxu1 %v987_v14  ;;  %v1431_v49 = vpop.f32.mrb[67].mxu1  ;;  %v1010_v36 = vand.u32 15, %v1231_v12 }
 0x185   : > { %1062 = vmatprep.subr.bf16.mxu1 %v1673_v40  ;;  %v1674_v16 = vmov 1.0|1.0  }
 0x186   : > { %v946_v26 = vadd.f32 %v2048_v0, %v913_v55  ;;  %v971_v27 = vmax.f32 %v945_v21, 0.0  ;;  %v1011_v51 = vsub.s32 0, %v1010_v36 }
 0x188   : > { %v972_v30 = vmax.f32 %v946_v26, 0.0  ;;  %v1012_v62 = vsel %vm1006_vm11, %v1011_v51, %v1010_v36 }
 0x189   : > { %v671_v31 = vpop.f32.mrb[68].mxu1  ;;  %v871_v24 = vpop.f32.mrb[68].mxu0  ;;  %vm1020_vm12 = vcmp.ne.s32.totalorder %v1012_v62, 0  ;;  %vm1022_vm13 = vcmp.lt.s32.totalorder %v1012_v62, 0  ;;  %v1026_v6 = vadd.s32 16, %v1012_v62 }
 0x18a   : > { %v988_v32 = vpack.c.bf16 %v972_v30, %v971_v27  ;;  %v672_v42 = vadd.f32 %v671_v31, %v2024_v25  ;;  %v914_v33 = vadd.f32 %v871_v24, %v664_v47  ;;  %v1434_v53 = vpop.f32.mrb[69].mxu1  ;;  %v1498_v17 = vpop.f32.mrb[69].mxu0  ;;  %vm2112_vm14 = vmand %vm1022_vm13, %vm1020_vm12 }
 0x18b   : > { %v674_v37 = vpop.f32.mrb[70].mxu1  ;;  %v874_v43 = vpop.f32.mrb[70].mxu0  ;;  %v1028_v14 = vsel %vm2112_vm14, %v1026_v6, %v1012_v62 }
 0x18c   : > { %v947_v44 = vadd.f32 %v2048_v0, %v914_v33  ;;  %v675_v28 = vadd.f32 %v674_v37, %v2028_v29  ;;  %v915_v46 = vadd.f32 %v874_v43, %v667_v22  ;;  %v1499_v1 = vpop.f32.mrb[71].mxu0  ;;  %1063 = vmatpush1.bf16.msra.mxu1 %v988_v32  ;;  %v1435_v48 = vpop.f32.mrb[71].mxu1  ;;  %vm1030_vm2 = vcmp.lt.s32.totalorder %v1028_v14, 13 }
 0x18d   : > { %1064 = vmatprep.subr.bf16.mxu1 %v1673_v40  ;;  %vm1032_vm3 = vmand %vm1004_vm1, %vm1030_vm2 }
 0x18e   : > { %v948_v60 = vadd.f32 %v2048_v0, %v915_v46  ;;  %v973_v25 = vmax.f32 %v947_v44, 0.0  ;;  %vm1236_vm4 = vmpackc.low %vm1032_vm3, %vm1032_vm3 }
 0x190   : > { %v974_v52 = vmax.f32 %v948_v60, 0.0 }
 0x191   : > { %v679_v56 = vpop.f32.mrb[72].mxu1  ;;  %v879_v57 = vpop.f32.mrb[72].mxu0 }
 0x192   : > { %v989_v58 = vpack.c.bf16 %v974_v52, %v973_v25  ;;  %v680_v50 = vadd.f32 %v679_v56, %v2033_v35  ;;  %v916_v34 = vadd.f32 %v879_v57, %v672_v42  ;;  %v1438_v29 = vpop.f32.mrb[73].mxu1  ;;  %v1502_v59 = vpop.f32.mrb[73].mxu0 }
 0x193   : > { %v682_v3 = vpop.f32.mrb[74].mxu1  ;;  %v882_v63 = vpop.f32.mrb[74].mxu0 }
 0x194   : > { %v949_v2 = vadd.f32 %v2048_v0, %v916_v34  ;;  %v683_v5 = vadd.f32 %v682_v3, %v2037_v39  ;;  %v917_v54 = vadd.f32 %v882_v63, %v675_v28  ;;  %v1503_v41 = vpop.f32.mrb[75].mxu0  ;;  %1065 = vmatpush1.bf16.msra.mxu1 %v989_v58  ;;  %v1439_v38 = vpop.f32.mrb[75].mxu1 }
 0x195   : > { %1066 = vmatprep.subr.bf16.mxu1 %v1673_v40 }
 0x196   : > { %v950_v35 = vadd.f32 %v2048_v0, %v917_v54  ;;  %v975_v7 = vmax.f32 %v949_v2, 0.0 }
 0x198   : > { %v976_v8 = vmax.f32 %v950_v35, 0.0 }
 0x199   : > { %v887_v11 = vpop.f32.mrb[76].mxu0 }
 0x19a   : > { %v990_v45 = vpack.c.bf16 %v976_v8, %v975_v7  ;;  %v918_v39 = vadd.f32 %v887_v11, %v680_v50  ;;  %v1506_v61 = vpop.f32.mrb[77].mxu0 }
 0x19b   : > { %v890_v13 = vpop.f32.mrb[78].mxu0 }
 0x19c   : > { %v951_v47 = vadd.f32 %v2048_v0, %v918_v39  ;;  %v919_v15 = vadd.f32 %v890_v13, %v683_v5  ;;  %v1507_v18 = vpop.f32.mrb[79].mxu0  ;;  %1067 = vmatpush1.bf16.msra.mxu1 %v990_v45 }
 0x19d   : > { %1068 = vmatprep.subr.bf16.mxu1 %v1673_v40 }
 0x19e   : > { %v952_v19 = vadd.f32 %v2048_v0, %v919_v15  ;;  %v977_v4 = vmax.f32 %v951_v47, 0.0 }
 0x1a0   : > { %v978_v20 = vmax.f32 %v952_v19, 0.0 }
 0x1a2   : > { %v991_v9 = vpack.c.bf16 %v978_v20, %v977_v4 }
 0x1a4   : > { %1069 = vmatpush1.bf16.msra.mxu1 %v991_v9 }
 0x1a7   : > { %1237 = vmatmul.mubr.msk.bf16.vlgmr.msra.gmra.mrb[76].mxu1 %vm1236_vm4, %v1674_v16 }
 0x27a   : > { %v1078_v21 = vpop.f32.mrb[76].mxu1 }
 0x27b   : > { %v1084_v22 = vmul.f32 0.00591716, %v1078_v21  ;;  %v1080_v40 = vpop.f32.mrb[77].mxu1 }
 0x27c   : > { %v1081_v0 = vpop.f32.mrb[78].mxu1 }
 0x27d   : > { %1085 = vst [vmem:[%s162_s28] sm:$0x1] %v1084_v22  ;;  %v1082_v55 = vpop.f32.mrb[79].mxu1 }
 0x27e   : > { %1620 = shalt.err (!%p1617_p3)
}
 0x27f   : > { %s1621_s11 = scalar_lea.hbm %s2128_s5, 16  ;;  %s1625_s20 = scalar_lea.hbm %s2173_s3, 32 }
 0x280   : > { %p1622_p4 = scmp.ne.s32.totalorder %s2128_s5, %s1621_s11  ;;  %p1626_p9 = scmp.lt.u32.totalorder %s2128_s5, %s2173_s3 }
 0x281   : > { %p1627_p10 = scmp.lt.u32.totalorder %s1625_s20, %s1621_s11  ;;  %p1629_p12 = scmp.lt.u32.totalorder %s1621_s11, %s2128_s5 }
 0x282   : > { %p1623_p7 = pnand %p1622_p4, %p1734_p5 }
 0x283   : > { %p1628_p11 = por %p1627_p10, %p1626_p9 }
 0x284   : > { %p1624_p8 = pneg %p1623_p7 }
 0x285   : > { %p1630_p13 = por %p1629_p12, %p1628_p11 }
 0x287   : > { %p1631_p0 = pnand %p1630_p13, %p1624_p8 }
 0x289   : > { %1634 = shalt.err (!%p1631_p0)
}
 0x28a   : > { %1525 = dma.vmem_to_hbm [thread:$0]  (%p1734_p5), %s2130_s29, 16, %s2128_s5, %s1087_s6  }
 0x28b PF: > { %p1531_p1 = scmp.ge.s32.totalorder %s1669_s15, 2  ;;  %s1111_s25 = sand.u32 1, %s1657_s12  }
 0x28c   : > { %s1112_s26 = scalar_lea.sflag [#allocation3], %s1111_s25 }
 0x28d   : > { %p1528_p2 = pnand %p1531_p1, %p1738_p6 }
 0x28f   : > { %1652 = dma.done.wait (!%p1528_p2), %s1112_s26, 16  }
 0x290   : > { %1654 = vsyncadd (!%p1528_p2), %s1112_s26, 4294967280  ;;  %p13_p3 = scmp.ge.s32.totalorder %s1721_s18, 4   ;;  %s2178_s12 = smov %s1661_s13 }
 0x291   : > { %s2179_s13 = smov %s1665_s14  ;;  %s2180_s14 = smov %s1732_s21 }
 0x292   : > { %s2181_s15 = smov %s1721_s18  ;;  %15 = sbr.rel (!%p13_p3) target bundleno = 3 (0x3), region = 69 }
 0x299   :  { %1116 = vsyncpa [#allocation3], 1 }
 0x29a   :  { %1118 = vsyncpa [#allocation3 + $0x1], 1 }

</bundles_post_ra>
